<compile_context>
chip_gen: v7x
topology: tpu7x:2x2x1
jax: 0.10.0
libtpu: 0.0.40
codegen_flags: <defaults>
</compile_context>

<pallas_src>
import functools

import jax
import jax.numpy as jnp
import numpy as np
from jax.experimental import pallas as pl
from jax.experimental.pallas import tpu as pltpu

_LANE = 128
_SUBLANE = 8
_EPS = 1e-5  # nn.BatchNorm1d default


def _round_up(n, m):
    return ((n + m - 1) // m) * m


def _roll_rows(x, shift):
    """np.roll along axis 0 (sublanes) on the XLU; shift made non-negative."""
    return pltpu.roll(x, shift % x.shape[0], axis=0)


def _conv3_pair(h_even, h_odd, w_flat, at_start, at_end):
    """k=3, pad=1 'same' conv + ReLU on the logically interleaved sequence
    (..., h_even[m], h_odd[m], h_even[m+1], ...), kept as parity planes.

    h_even/h_odd: (T, Cin_p) planes, row m = positions 2m / 2m+1 of a sequence.
    w_flat      : (3*Cin_p, Cout_p) tap-major flattened weights.
    at_start/at_end: (T, 1) masks marking m==0 / m==L-1 (per-sequence zero pad).
    """
    # even output 2m   needs u[2m-1], u[2m],   u[2m+1]
    # odd  output 2m+1 needs u[2m],   u[2m+1], u[2m+2]
    h_odd_m1 = jnp.where(at_start, 0.0, _roll_rows(h_odd, 1))    # u[2m-1] (0-pad)
    h_even_p1 = jnp.where(at_end, 0.0, _roll_rows(h_even, -1))   # u[2m+2] (0-pad)
    cat_e = jnp.concatenate([h_odd_m1, h_even, h_odd], axis=1)   # (T, 3*Cin_p)
    cat_o = jnp.concatenate([h_even, h_odd, h_even_p1], axis=1)
    z_e = jnp.maximum(jnp.dot(cat_e, w_flat, preferred_element_type=jnp.float32), 0.0)
    z_o = jnp.maximum(jnp.dot(cat_o, w_flat, preferred_element_type=jnp.float32), 0.0)
    return z_e, z_o


def _partial_stats(z_e, z_o):
    """(8, C) tile: row0 = per-channel sum, row1 = per-channel sum of squares."""
    s = jnp.sum(z_e, axis=0, keepdims=True) + jnp.sum(z_o, axis=0, keepdims=True)
    sq = (jnp.sum(z_e * z_e, axis=0, keepdims=True)
          + jnp.sum(z_o * z_o, axis=0, keepdims=True))
    pad = jnp.zeros((_SUBLANE - 2, s.shape[1]), jnp.float32)
    return jnp.concatenate([s, sq, pad], axis=0)


def _stage1_kernel(x_ref, w_ref, y_ref, st_ref, *, seq_len):
    """Fused 2x linear upsample + conv1(k=3,pad=1) + ReLU + partial BN1 stats.

    x_ref : (T, Cin_p)         un-upsampled rows (T = whole sequences * seq_len)
    w_ref : (3*Cin_p, Cout_p)  flattened conv1 weights
    y_ref : (2, T, Cout_p)     parity-split conv output (plane p = position 2m+p)
    st_ref: (8, Cout_p)        per-tile partial (sum, sumsq)
    """
    x = x_ref[...]
    nrows = x.shape[0]
    pos = jax.lax.broadcasted_iota(jnp.int32, (nrows, 1), 0) % seq_len
    at_start = pos == 0
    at_end = pos == seq_len - 1

    # scale_factor=2, mode='linear', align_corners=False == fixed 0.25/0.75
    # two-tap stencil with edge replication.
    x_m1 = jnp.where(at_start, x, _roll_rows(x, 1))
    x_p1 = jnp.where(at_end, x, _roll_rows(x, -1))
    u_even = 0.25 * x_m1 + 0.75 * x          # upsampled position 2m
    u_odd = 0.75 * x + 0.25 * x_p1           # upsampled position 2m+1

    y_e, y_o = _conv3_pair(u_even, u_odd, w_ref[...], at_start, at_end)
    y_ref[0] = y_e
    y_ref[1] = y_o
    st_ref[...] = _partial_stats(y_e, y_o)


def _stage2_kernel(y1_ref, w_ref, sc_ref, sh_ref, y2_ref, st_ref, *, seq_len):
    """Apply BN1 (scale/shift) + conv2(k=3,pad=1) + ReLU + partial BN2 stats."""
    sc = sc_ref[...]
    sh = sh_ref[...]
    h_e = y1_ref[0] * sc + sh
    h_o = y1_ref[1] * sc + sh
    nrows = h_e.shape[0]
    pos = jax.lax.broadcasted_iota(jnp.int32, (nrows, 1), 0) % seq_len
    z_e, z_o = _conv3_pair(h_e, h_o, w_ref[...], pos == 0, pos == seq_len - 1)
    y2_ref[0] = z_e
    y2_ref[1] = z_o
    st_ref[...] = _partial_stats(z_e, z_o)


def _bn_apply_kernel(y_ref, sc_ref, sh_ref, o_ref):
    """Apply BN2 scale/shift (lane-dense, padded channels stay zero)."""
    o_ref[...] = y_ref[...] * sc_ref[...] + sh_ref[...]


def _seqs_per_tile(batch, seq_len, target_rows):
    """Whole sequences per row tile: nb | batch, nb*seq_len % 8 == 0 (or full)."""
    valid = [nb for nb in range(1, batch + 1)
             if batch % nb == 0 and ((nb * seq_len) % _SUBLANE == 0 or nb == batch)]
    under = [nb for nb in valid if nb * seq_len <= target_rows]
    return max(under) if under else min(valid)


def _cparams():
    return pltpu.CompilerParams(
        dimension_semantics=("parallel",),
        vmem_limit_bytes=32 * 1024 * 1024)


def decoder_block_forward(x, params, *, target_rows=1024):
    """DecoderBlock forward (default scale_factor=2 path).

    x: (B, Cin, L) NCL. Returns (B, Cout, 2L).
    """
    # TODO(synk): the module's `shape=` argument (arbitrary per-axis scale
    # factors) is not implemented; only the default scale_factor=2 forward is.
    w1, w2, g1, b1, g2, b2 = params
    B, Cin, L = x.shape
    Cout = w1.shape[0]
    cin_p = _round_up(Cin, _LANE)
    cout_p = _round_up(Cout, _LANE)

    nb = _seqs_per_tile(B, L, target_rows)
    tile_rows = nb * L
    n_tiles = B // nb
    n_rows = B * L                 # un-upsampled row count
    n_norm = 2 * n_rows            # positions each BatchNorm normalizes over

    # ---- layout plumbing (plain JAX) --------------------------------------
    x_slab = jnp.transpose(x.astype(jnp.float32), (0, 2, 1)).reshape(n_rows, Cin)
    x_slab = jnp.pad(x_slab, ((0, 0), (0, cin_p - Cin)))

    def flat_weight(w, cin, cin_pad):
        wt = jnp.transpose(w.astype(jnp.float32), (2, 1, 0))        # (3, cin, Cout)
        wt = jnp.pad(wt, ((0, 0), (0, cin_pad - cin), (0, cout_p - Cout)))
        return wt.reshape(3 * cin_pad, cout_p)

    w1_flat = flat_weight(w1, Cin, cin_p)
    w2_flat = flat_weight(w2, Cout, cout_p)

    def pad_vec(v):
        return jnp.pad(v.astype(jnp.float32), (0, cout_p - Cout))

    g1p, b1p, g2p, b2p = pad_vec(g1), pad_vec(b1), pad_vec(g2), pad_vec(b2)

    full = lambda a: pl.BlockSpec(a.shape, lambda i, nd=a.ndim: (0,) * nd)
    row_spec = pl.BlockSpec((tile_rows, cin_p), lambda i: (i, 0))
    plane_spec = pl.BlockSpec((2, tile_rows, cout_p), lambda i: (0, i, 0))
    stat_spec = pl.BlockSpec((_SUBLANE, cout_p), lambda i: (i, 0))
    vec_spec = pl.BlockSpec((1, cout_p), lambda i: (0, 0))
    stat_shape = jax.ShapeDtypeStruct((n_tiles * _SUBLANE, cout_p), jnp.float32)
    act_shape = jax.ShapeDtypeStruct((2, n_rows, cout_p), jnp.float32)

    def bn_scale_shift(stats, gamma, beta):
        stats = stats.reshape(n_tiles, _SUBLANE, cout_p)
        total = jnp.sum(stats[:, 0, :], axis=0)
        total_sq = jnp.sum(stats[:, 1, :], axis=0)
        mean = total / n_norm
        var = jnp.maximum(total_sq / n_norm - mean * mean, 0.0)
        scale = gamma * jax.lax.rsqrt(var + _EPS)
        shift = beta - mean * scale
        return scale.reshape(1, cout_p), shift.reshape(1, cout_p)

    # ---- pass 1: fused upsample + conv1 + ReLU, partial BN1 stats ----------
    y1, st1 = pl.pallas_call(
        functools.partial(_stage1_kernel, seq_len=L),
        grid=(n_tiles,),
        in_specs=[row_spec, full(w1_flat)],
        out_specs=(plane_spec, stat_spec),
        out_shape=(act_shape, stat_shape),
        compiler_params=_cparams(),
    )(x_slab, w1_flat)
    sc1, sh1 = bn_scale_shift(st1, g1p, b1p)

    # ---- pass 2: BN1 apply + conv2 + ReLU, partial BN2 stats ---------------
    y2, st2 = pl.pallas_call(
        functools.partial(_stage2_kernel, seq_len=L),
        grid=(n_tiles,),
        in_specs=[plane_spec, full(w2_flat), vec_spec, vec_spec],
        out_specs=(plane_spec, stat_spec),
        out_shape=(act_shape, stat_shape),
        compiler_params=_cparams(),
    )(y1, w2_flat, sc1, sh1)
    sc2, sh2 = bn_scale_shift(st2, g2p, b2p)

    # ---- pass 3: BN2 apply (lane-dense, padded channels) --------------------
    out_ps = pl.pallas_call(
        _bn_apply_kernel,
        grid=(n_tiles,),
        in_specs=[plane_spec, vec_spec, vec_spec],
        out_specs=plane_spec,
        out_shape=act_shape,
        compiler_params=_cparams(),
    )(y2, sc2, sh2)

    # (2, B*L, Cout_p): [parity, b*L+m, c] -> (B, Cout, 2L) with j = 2m + parity
    # (channel unpad + transpose is pure layout plumbing, fused by XLA)
    out = (out_ps[:, :, :Cout]
           .reshape(2, B, L, Cout)
           .transpose(1, 3, 2, 0)
           .reshape(B, Cout, 2 * L))
    return out


# ---------------- pure-JAX reference (sanity check) --------------------------
def _upsample_linear_ncl(x, out_len):
    """F.interpolate(mode='linear', align_corners=False) on an NCL tensor."""
    L = x.shape[-1]
    dst = jnp.arange(out_len, dtype=jnp.float32)
    src = (dst + 0.5) * (L / out_len) - 0.5
    src = jnp.clip(src, 0.0, L - 1)
    i0 = jnp.floor(src).astype(jnp.int32)
    i1 = jnp.minimum(i0 + 1, L - 1)
    frac = src - i0.astype(jnp.float32)
    return x[..., i0] * (1.0 - frac) + x[..., i1] * frac


def _ref_forward(x, params):
    B, Cin, L = x.shape
    out_len = 2 * L
    w1, w2, g1, b1, g2, b2 = params
    h = _upsample_linear_ncl(x, out_len)

    def block(h, w, g, b):
        Lh = h.shape[-1]
        hp = jnp.pad(h, ((0, 0), (0, 0), (1, 1)))
        y = (jnp.einsum('oc,bcl->bol', w[:, :, 0], hp[:, :, 0:Lh])
             + jnp.einsum('oc,bcl->bol', w[:, :, 1], hp[:, :, 1:Lh + 1])
             + jnp.einsum('oc,bcl->bol', w[:, :, 2], hp[:, :, 2:Lh + 2]))
        y = jnp.maximum(y, 0.0)
        mean = y.mean(axis=(0, 2), keepdims=True)
        var = ((y - mean) ** 2).mean(axis=(0, 2), keepdims=True)
        return ((y - mean) * jax.lax.rsqrt(var + _EPS) * g.reshape(1, -1, 1)
                + b.reshape(1, -1, 1))

    h = block(h, w1, g1, b1)
    return block(h, w2, g2, b2)


if __name__ == "__main__":
    B, Cin, Cout, L = 2, 4, 8, 16

    key = jax.random.PRNGKey(0)
    kx, k1, k2, k3, k4, k5, k6 = jax.random.split(key, 7)
    x = jax.random.normal(kx, (B, Cin, L), dtype=jnp.float32)
    w1 = 0.2 * jax.random.normal(k1, (Cout, Cin, 3), dtype=jnp.float32)
    w2 = 0.2 * jax.random.normal(k2, (Cout, Cout, 3), dtype=jnp.float32)
    g1 = 1.0 + 0.1 * jax.random.normal(k3, (Cout,), dtype=jnp.float32)
    b1 = 0.1 * jax.random.normal(k4, (Cout,), dtype=jnp.float32)
    g2 = 1.0 + 0.1 * jax.random.normal(k5, (Cout,), dtype=jnp.float32)
    b2 = 0.1 * jax.random.normal(k6, (Cout,), dtype=jnp.float32)
    params = (w1, w2, g1, b1, g2, b2)

    ref = _ref_forward(x, params)

    # Default tiling (single tile at this tiny size).
    out = jax.block_until_ready(decoder_block_forward(x, params))
    assert out.shape == (B, Cout, 2 * L)
    np.testing.assert_allclose(np.asarray(out), np.asarray(ref),
                               rtol=1e-4, atol=1e-4)

    # Force multiple row tiles to exercise the grid + cross-tile BN reduction.
    out_tiled = jax.block_until_ready(
        decoder_block_forward(x, params, target_rows=16))
    np.testing.assert_allclose(np.asarray(out_tiled), np.asarray(ref),
                               rtol=1e-4, atol=1e-4)

    print("KERNEL_OK")
</pallas_src>

<mosaic_0001>
module attributes {stable_mosaic.version = 11 : i64} {
  func.func @_stage1_kernel(%arg0: i32, %arg1: memref<32x128xf32, #tpu.memory_space<vmem>>, %arg2: memref<384x128xf32, #tpu.memory_space<vmem>>, %arg3: memref<2x32x128xf32, #tpu.memory_space<vmem>>, %arg4: memref<8x128xf32, #tpu.memory_space<vmem>>) attributes {dimension_semantics = [#tpu.dimension_semantics<parallel>], iteration_bounds = array<i64: 1>, scalar_prefetch = 0 : i64, scratch_operands = 0 : i64, tpu.core_type = #tpu.core_type<tc>, window_params = [{transform_indices = @transform_0, window_bounds = array<i64: 32, 128>}, {pipeline_mode = #tpu.pipeline_mode<synchronous>, transform_indices = @transform_1, window_bounds = array<i64: 384, 128>}, {transform_indices = @transform_2, window_bounds = array<i64: 2, 32, 128>}, {transform_indices = @transform_3, window_bounds = array<i64: 8, 128>}]} {
    %c0 = arith.constant 0 : index
    %c0_0 = arith.constant 0 : index
    %0 = vector.load %arg1[%c0, %c0_0] : memref<32x128xf32, #tpu.memory_space<vmem>>, vector<32x128xf32>
    %1 = tpu.iota {dimensions = array<i32: 0>} : vector<32x1xi32>
    %c16_i32 = arith.constant 16 : i32
    %c0_i32 = arith.constant 0 : i32
    %2 = arith.cmpi eq, %c16_i32, %c0_i32 : i32
    %c1_i32 = arith.constant 1 : i32
    %3 = arith.select %2, %c1_i32, %c16_i32 : i32
    %4 = vector.broadcast %3 : i32 to vector<32x1xi32>
    %5 = arith.remsi %1, %4 : vector<32x1xi32>
    %c0_i32_1 = arith.constant 0 : i32
    %6 = vector.broadcast %c0_i32_1 : i32 to vector<32x1xi32>
    %7 = arith.cmpi ne, %5, %6 : vector<32x1xi32>
    %c0_i32_2 = arith.constant 0 : i32
    %8 = vector.broadcast %c0_i32_2 : i32 to vector<32x1xi32>
    %9 = arith.cmpi slt, %5, %8 : vector<32x1xi32>
    %c0_i32_3 = arith.constant 0 : i32
    %10 = arith.cmpi slt, %3, %c0_i32_3 : i32
    %11 = vector.broadcast %10 : i1 to vector<32x1xi1>
    %12 = vector.broadcast %11 : vector<32x1xi1> to vector<32x1xi1>
    %13 = arith.xori %9, %12 : vector<32x1xi1>
    %14 = arith.andi %13, %7 : vector<32x1xi1>
    %15 = vector.broadcast %3 : i32 to vector<32x1xi32>
    %16 = arith.addi %5, %15 : vector<32x1xi32>
    %17 = arith.select %14, %16, %5 : vector<32x1xi1>, vector<32x1xi32>
    %c0_i32_4 = arith.constant 0 : i32
    %18 = vector.broadcast %c0_i32_4 : i32 to vector<32x1xi32>
    %19 = arith.cmpi eq, %17, %18 : vector<32x1xi32>
    %c15_i32 = arith.constant 15 : i32
    %20 = vector.broadcast %c15_i32 : i32 to vector<32x1xi32>
    %21 = arith.cmpi eq, %17, %20 : vector<32x1xi32>
    %c1_i32_5 = arith.constant 1 : i32
    %22 = tpu.dynamic_rotate %0 by %c1_i32_5 dim 0 : vector<32x128xf32>, i32 -> vector<32x128xf32>
    %23 = vector.shape_cast %19 : vector<32x1xi1> to vector<32x1xi1>
    %24 = vector.broadcast %23 : vector<32x1xi1> to vector<32x128xi1>
    %25 = arith.select %24, %0, %22 : vector<32x128xi1>, vector<32x128xf32>
    %c31_i32 = arith.constant 31 : i32
    %26 = tpu.dynamic_rotate %0 by %c31_i32 dim 0 : vector<32x128xf32>, i32 -> vector<32x128xf32>
    %27 = vector.shape_cast %21 : vector<32x1xi1> to vector<32x1xi1>
    %28 = vector.broadcast %27 : vector<32x1xi1> to vector<32x128xi1>
    %29 = arith.select %28, %0, %26 : vector<32x128xi1>, vector<32x128xf32>
    %cst = arith.constant 2.500000e-01 : f32
    %30 = vector.broadcast %cst : f32 to vector<32x128xf32>
    %31 = arith.mulf %30, %25 : vector<32x128xf32>
    %cst_6 = arith.constant 7.500000e-01 : f32
    %32 = vector.broadcast %cst_6 : f32 to vector<32x128xf32>
    %33 = arith.mulf %32, %0 : vector<32x128xf32>
    %34 = arith.addf %31, %33 : vector<32x128xf32>
    %cst_7 = arith.constant 7.500000e-01 : f32
    %35 = vector.broadcast %cst_7 : f32 to vector<32x128xf32>
    %36 = arith.mulf %35, %0 : vector<32x128xf32>
    %cst_8 = arith.constant 2.500000e-01 : f32
    %37 = vector.broadcast %cst_8 : f32 to vector<32x128xf32>
    %38 = arith.mulf %37, %29 : vector<32x128xf32>
    %39 = arith.addf %36, %38 : vector<32x128xf32>
    %c0_9 = arith.constant 0 : index
    %c0_10 = arith.constant 0 : index
    %40 = vector.load %arg2[%c0_9, %c0_10] : memref<384x128xf32, #tpu.memory_space<vmem>>, vector<384x128xf32>
    %c1_i32_11 = arith.constant 1 : i32
    %41 = tpu.dynamic_rotate %39 by %c1_i32_11 dim 0 : vector<32x128xf32>, i32 -> vector<32x128xf32>
    %cst_12 = arith.constant 0.000000e+00 : f32
    %42 = vector.shape_cast %19 : vector<32x1xi1> to vector<32x1xi1>
    %43 = vector.broadcast %42 : vector<32x1xi1> to vector<32x128xi1>
    %44 = vector.broadcast %cst_12 : f32 to vector<32x128xf32>
    %45 = arith.select %43, %44, %41 : vector<32x128xi1>, vector<32x128xf32>
    %c31_i32_13 = arith.constant 31 : i32
    %46 = tpu.dynamic_rotate %34 by %c31_i32_13 dim 0 : vector<32x128xf32>, i32 -> vector<32x128xf32>
    %cst_14 = arith.constant 0.000000e+00 : f32
    %47 = vector.shape_cast %21 : vector<32x1xi1> to vector<32x1xi1>
    %48 = vector.broadcast %47 : vector<32x1xi1> to vector<32x128xi1>
    %49 = vector.broadcast %cst_14 : f32 to vector<32x128xf32>
    %50 = arith.select %48, %49, %46 : vector<32x128xi1>, vector<32x128xf32>
    %51 = tpu.concatenate %45, %34, %39 in 1 : vector<32x128xf32>, vector<32x128xf32>, vector<32x128xf32> -> vector<32x384xf32>
    %52 = tpu.concatenate %34, %39, %50 in 1 : vector<32x128xf32>, vector<32x128xf32>, vector<32x128xf32> -> vector<32x384xf32>
    %cst_15 = arith.constant dense<0.000000e+00> : vector<32x128xf32>
    %53 = tpu.matmul %51, %40, %cst_15 {dimension_numbers = #tpu.dot_dimension_numbers<[1], [0], [0], [1], [0, 0, 1, 1], [], []>} : vector<32x384xf32>, vector<384x128xf32>, vector<32x128xf32> -> vector<32x128xf32>
    %cst_16 = arith.constant 0.000000e+00 : f32
    %54 = vector.broadcast %cst_16 : f32 to vector<32x128xf32>
    %55 = arith.maximumf %53, %54 : vector<32x128xf32>
    %cst_17 = arith.constant dense<0.000000e+00> : vector<32x128xf32>
    %56 = tpu.matmul %52, %40, %cst_17 {dimension_numbers = #tpu.dot_dimension_numbers<[1], [0], [0], [1], [0, 0, 1, 1], [], []>} : vector<32x384xf32>, vector<384x128xf32>, vector<32x128xf32> -> vector<32x128xf32>
    %cst_18 = arith.constant 0.000000e+00 : f32
    %57 = vector.broadcast %cst_18 : f32 to vector<32x128xf32>
    %58 = arith.maximumf %56, %57 : vector<32x128xf32>
    %c0_19 = arith.constant 0 : index
    %c0_20 = arith.constant 0 : index
    %c0_21 = arith.constant 0 : index
    %59 = vector.load %arg3[%c0_19, %c0_20, %c0_21] : memref<2x32x128xf32, #tpu.memory_space<vmem>>, vector<1x32x128xf32>
    %60 = vector.shape_cast %59 : vector<1x32x128xf32> to vector<32x128xf32>
    %61 = vector.shape_cast %55 : vector<32x128xf32> to vector<1x32x128xf32>
    tpu.vector_store %arg3[%c0_19, %c0_20, %c0_21], %61 {strides = array<i32>} : memref<2x32x128xf32, #tpu.memory_space<vmem>>, vector<1x32x128xf32>,
    %c1 = arith.constant 1 : index
    %c0_22 = arith.constant 0 : index
    %c0_23 = arith.constant 0 : index
    %62 = vector.load %arg3[%c1, %c0_22, %c0_23] : memref<2x32x128xf32, #tpu.memory_space<vmem>>, vector<1x32x128xf32>
    %63 = vector.shape_cast %62 : vector<1x32x128xf32> to vector<32x128xf32>
    %64 = vector.shape_cast %58 : vector<32x128xf32> to vector<1x32x128xf32>
    tpu.vector_store %arg3[%c1, %c0_22, %c0_23], %64 {strides = array<i32>} : memref<2x32x128xf32, #tpu.memory_space<vmem>>, vector<1x32x128xf32>,
    %cst_24 = arith.constant dense<0.000000e+00> : vector<128xf32>
    %65 = vector.multi_reduction <add>, %55, %cst_24 [0] : vector<32x128xf32> to vector<128xf32>
    %66 = vector.shape_cast %65 : vector<128xf32> to vector<1x128xf32>
    %cst_25 = arith.constant dense<0.000000e+00> : vector<128xf32>
    %67 = vector.multi_reduction <add>, %58, %cst_25 [0] : vector<32x128xf32> to vector<128xf32>
    %68 = vector.shape_cast %67 : vector<128xf32> to vector<1x128xf32>
    %69 = arith.addf %66, %68 : vector<1x128xf32>
    %70 = arith.mulf %55, %55 : vector<32x128xf32>
    %cst_26 = arith.constant dense<0.000000e+00> : vector<128xf32>
    %71 = vector.multi_reduction <add>, %70, %cst_26 [0] : vector<32x128xf32> to vector<128xf32>
    %72 = vector.shape_cast %71 : vector<128xf32> to vector<1x128xf32>
    %73 = arith.mulf %58, %58 : vector<32x128xf32>
    %cst_27 = arith.constant dense<0.000000e+00> : vector<128xf32>
    %74 = vector.multi_reduction <add>, %73, %cst_27 [0] : vector<32x128xf32> to vector<128xf32>
    %75 = vector.shape_cast %74 : vector<128xf32> to vector<1x128xf32>
    %76 = arith.addf %72, %75 : vector<1x128xf32>
    %cst_28 = arith.constant 0.000000e+00 : f32
    %77 = vector.broadcast %cst_28 : f32 to vector<6x128xf32>
    %78 = tpu.concatenate %69, %76, %77 in 0 : vector<1x128xf32>, vector<1x128xf32>, vector<6x128xf32> -> vector<8x128xf32>
    %c0_29 = arith.constant 0 : index
    %c0_30 = arith.constant 0 : index
    %79 = vector.load %arg4[%c0_29, %c0_30] : memref<8x128xf32, #tpu.memory_space<vmem>>, vector<8x128xf32>
    tpu.vector_store %arg4[%c0_29, %c0_30], %78 {strides = array<i32>} : memref<8x128xf32, #tpu.memory_space<vmem>>, vector<8x128xf32>,
    return
  }
  func.func @transform_0(%arg0: i32) -> (i32, i32) {
    %c0_i32 = arith.constant 0 : i32
    %c0_i32_0 = arith.constant 0 : i32
    return %arg0, %c0_i32 : i32, i32
  }
  func.func @transform_1(%arg0: i32) -> (i32, i32) {
    %c0_i32 = arith.constant 0 : i32
    %c0_i32_0 = arith.constant 0 : i32
    %c0_i32_1 = arith.constant 0 : i32
    return %c0_i32, %c0_i32_0 : i32, i32
  }
  func.func @transform_2(%arg0: i32) -> (i32, i32, i32) {
    %c0_i32 = arith.constant 0 : i32
    %c0_i32_0 = arith.constant 0 : i32
    %c0_i32_1 = arith.constant 0 : i32
    return %c0_i32, %arg0, %c0_i32_0 : i32, i32, i32
  }
  func.func @transform_3(%arg0: i32) -> (i32, i32) {
    %c0_i32 = arith.constant 0 : i32
    %c0_i32_0 = arith.constant 0 : i32
    return %arg0, %c0_i32 : i32, i32
  }
}

</mosaic_0001>

<bundles_post_ra>
// kernel: tpu_custom_call.1
= control target key start
LH: loop header
LB: loop body
LE: loop exit
PB: predicated region body
PF: predicated region fallthrough
CT: control target
= control target key end

     0   :  { %9 = vsyncpa [#allocation3], 0  ;;  %s1458_s0 = inlined_call_operand.hbm [shape: f32[32,128], index: 0, kind: input, shape index: {}]   ;;  %s1459_s1 = inlined_call_operand.hbm [shape: f32[384,128], index: 1, kind: input, shape index: {}]   ;;  %s1460_s2 = inlined_call_operand.hbm [shape: f32[2,32,128], index: 2, kind: output, shape index: {0}]   ;;  %s1461_s3 = inlined_call_operand.hbm [shape: f32[8,128], index: 3, kind: output, shape index: {1}]  }
   0x1   :  { %10 = vsyncpa [#allocation6], 0 }
   0x2   :  { %11 = vsyncpa [#allocation4], 0 }
   0x3   :  { %12 = vsyncpa [#allocation9], 0  ;;  %s1124_s12 = smov [#allocation2]   ;;  %s1028_s16 = scalar_lea.hbm %s1458_s0, 512 }
   0x4   :  { %s18_s13 = sshll.u32 %s1124_s12, 4  ;;  %p1029_p0 = scmp.ne.s32.totalorder %s1458_s0, %s1028_s16  ;;  %s19_s13 = int_to_ptr.vmem [resolvable:$true] %s18_s13 }
   0x5   :  { %p1032_p1 = scmp.lt.u32.totalorder %s1028_s16, %s1458_s0 }
   0x7   :  { %p1034_p2 = pnand %p1032_p1, %p1029_p0 }
   0x9   :  { %1037 = shalt.err (!%p1034_p2)
}
   0xa   :  { %s1038_s21 = scalar_lea.vmem %s19_s13, 512  ;;  %p1043_p4 = scmp.lt.s32.totalorder %s19_s13, %s19_s13 }
   0xb   :  { %p1039_p3 = scmp.ne.s32.totalorder %s19_s13, %s1038_s21  ;;  %p1044_p5 = scmp.lt.s32.totalorder %s1038_s21, %s1038_s21 }
   0xd   :  { %p1045_p6 = por %p1044_p5, %p1043_p4 }
   0xf   :  { %p1046_p7 = pnand %p1045_p6, %p1039_p3 }
  0x11   :  { %1049 = shalt.err (!%p1046_p7)
}
  0x12   :  { %s1125_s22 = smov 128   ;;  %s1126_s23 = smov 8  }
  0x13   :  { %24 = dma.hbm_to_vmem [thread:$0]  %s1458_s0, 512, %s19_s13, [#allocation3], %s1125_s22, %s1125_s22, %s1126_s23  }
  0x14   :  { %s1127_s26 = smov [#allocation5]   ;;  %s1050_s30 = scalar_lea.hbm %s1459_s1, 6144 }
  0x15   :  { %s30_s27 = sshll.u32 %s1127_s26, 4  ;;  %p1051_p8 = scmp.ne.s32.totalorder %s1459_s1, %s1050_s30  ;;  %s31_s27 = int_to_ptr.vmem [resolvable:$true] %s30_s27 }
  0x16   :  { %p1054_p9 = scmp.lt.u32.totalorder %s1050_s30, %s1459_s1 }
  0x18   :  { %p1056_p10 = pnand %p1054_p9, %p1051_p8 }
  0x1a   :  { %1059 = shalt.err (!%p1056_p10)
}
  0x1b   :  { %s1060_s8 = scalar_lea.vmem %s31_s27, 6144  ;;  %p1065_p12 = scmp.lt.s32.totalorder %s31_s27, %s31_s27 }
  0x1c   :  { %p1061_p11 = scmp.ne.s32.totalorder %s31_s27, %s1060_s8  ;;  %p1066_p13 = scmp.lt.s32.totalorder %s1060_s8, %s1060_s8 }
  0x1e   :  { %p1067_p0 = por %p1066_p13, %p1065_p12 }
  0x20   :  { %p1068_p1 = pnand %p1067_p0, %p1061_p11 }
  0x22   :  { %1071 = shalt.err (!%p1068_p1)
}
  0x23   :  { %36 = dma.hbm_to_vmem [thread:$0]  %s1459_s1, 6144, %s31_s27, [#allocation6], %s1125_s22, %s1125_s22, %s1126_s23  }
  0x24   :  { %1116 = dma.done.wait [#allocation3], 512  }
  0x25   :  { %1117 = vsyncadd [#allocation3], 4294966784 }
  0x26   :  { %1118 = dma.done.wait [#allocation6], 6144  }
  0x27   :  { %1119 = vsyncadd [#allocation6], 4294961152  ;;  %v186_v0 = vld [vmem:[#allocation5 + $0x80] sm:$0xff]  ;;  %v187_v1 = vld [vmem:[#allocation5 + $0x88] sm:$0xff]  ;;  %v47_v3 = vlaneseq  ;;  %s1128_s1 = smov [#allocation7]  }
  0x28   :  { %v170_v2 = vld [vmem:[#allocation5] sm:$0xff]  ;;  %v1180_v4 = vpack.c.bf16 %v187_v1, %v186_v0  ;;  %v171_v5 = vld [vmem:[#allocation5 + $0x8] sm:$0xff]  ;;  %v188_v10 = vld [vmem:[#allocation5 + $0x90] sm:$0xff]  ;;  %s655_s10 = sshll.u32 %s1128_s1, 4  ;;  %s656_s10 = int_to_ptr.vmem [resolvable:$true] %s655_s10 }
  0x29   :  { %v202_v6 = vld [vmem:[#allocation5 + $0x100] sm:$0xff]  ;;  %v203_v7 = vld [vmem:[#allocation5 + $0x108] sm:$0xff]  ;;  %v1182_v8 = vpack.c.bf16 %v171_v5, %v170_v2  ;;  %v189_v11 = vld [vmem:[#allocation5 + $0x98] sm:$0xff]  ;;  %v1195_v22 = vshrl.u32 %v47_v3, 7  ;;  %s1072_s11 = scalar_lea.vmem %s656_s10, 1024  ;;  %p1077_p3 = scmp.lt.s32.totalorder %s656_s10, %s656_s10 }
  0x2a   :  { %v1184_v9 = vpack.c.bf16 %v203_v7, %v202_v6  ;;  %v172_v12 = vld [vmem:[#allocation5 + $0x10] sm:$0xff]  ;;  %895 = vmatprep.subr.bf16.mxu0 %v1180_v4  ;;  %v1187_v13 = vpack.c.bf16 %v189_v11, %v188_v10  ;;  %v173_v14 = vld [vmem:[#allocation5 + $0x18] sm:$0xff]  ;;  %v190_v19 = vld [vmem:[#allocation5 + $0xa0] sm:$0xff]  ;;  %p1073_p2 = scmp.ne.s32.totalorder %s656_s10, %s1072_s11  ;;  %p1078_p4 = scmp.lt.s32.totalorder %s1072_s11, %s1072_s11 }
  0x2b   :  { %v204_v15 = vld [vmem:[#allocation5 + $0x110] sm:$0xff]  ;;  %v205_v16 = vld [vmem:[#allocation5 + $0x118] sm:$0xff]  ;;  %897 = vmatpush3.bf16.msra.mxu0 %v1182_v8  ;;  %v1191_v17 = vpack.c.bf16 %v173_v14, %v172_v12  ;;  %v191_v20 = vld [vmem:[#allocation5 + $0xa8] sm:$0xff]  ;;  %v51_v33 = vadd.s32 24, %v1195_v22  ;;  %v49_v34 = vadd.s32 8, %v1195_v22  ;;  %v56_v43 = vand.u32 15, %v1195_v22 }
  0x2c   :  { %927 = vmatprep.subr.bf16.mxu1 %v1184_v9  ;;  %v1193_v18 = vpack.c.bf16 %v205_v16, %v204_v15  ;;  %v174_v21 = vld [vmem:[#allocation5 + $0x20] sm:$0xff]  ;;  %899 = vmatprep.subr.bf16.mxu0 %v1187_v13  ;;  %v1199_v23 = vpack.c.bf16 %v191_v20, %v190_v19  ;;  %v175_v24 = vld [vmem:[#allocation5 + $0x28] sm:$0xff]  ;;  %v192_v28 = vld [vmem:[#allocation5 + $0xb0] sm:$0xff]  ;;  %v1218_v44 = vadd.s32 16, %v1195_v22  ;;  %vm112_vm0 = vcmp.lt.s32.totalorder %v1195_v22, 1  ;;  %p1079_p5 = por %p1078_p4, %p1077_p3 }
  0x2d   :  { %929 = vmatpush3.bf16.msra.mxu1 %v1184_v9  ;;  %v206_v25 = vld [vmem:[#allocation5 + $0x120] sm:$0xff]  ;;  %v207_v26 = vld [vmem:[#allocation5 + $0x128] sm:$0xff]  ;;  %v193_v29 = vld [vmem:[#allocation5 + $0xb8] sm:$0xff]  ;;  %v1205_v32 = vpack.c.bf16 %v175_v24, %v174_v21  ;;  %v77_v47 = vand.u32 15, %v51_v33  ;;  %v63_v48 = vand.u32 15, %v49_v34  ;;  %vm1231_vm1 = vcmp.eq.s32.totalorder %v56_v43, 0 }
  0x2e   :  { %931 = vmatprep.subr.bf16.mxu1 %v1193_v18  ;;  %v1202_v27 = vpack.c.bf16 %v207_v26, %v206_v25  ;;  %v208_v30 = vld [vmem:[#allocation5 + $0x130] sm:$0xff]  ;;  %v209_v31 = vld [vmem:[#allocation5 + $0x138] sm:$0xff]  ;;  %v1211_v35 = vpack.c.bf16 %v193_v29, %v192_v28  ;;  %v194_v39 = vld [vmem:[#allocation5 + $0xc0] sm:$0xff]  ;;  %vm133_vm2 = vcmp.lt.s32.totalorder %v1195_v22, 7  ;;  %v70_v59 = vand.u32 15, %v1218_v44  ;;  %p1080_p6 = pnand %p1079_p5, %p1073_p2 }
  0x2f   :  { %901 = vmatpush3.bf16.msra.mxu0 %v1191_v17  ;;  %v176_v36 = vld [vmem:[#allocation5 + $0x30] sm:$0xff]  ;;  %v177_v37 = vld [vmem:[#allocation5 + $0x38] sm:$0xff]  ;;  %v1214_v38 = vpack.c.bf16 %v209_v31, %v208_v30  ;;  %v195_v40 = vld [vmem:[#allocation5 + $0xc8] sm:$0xff]  ;;  %vm1248_vm3 = vcmp.eq.s32.totalorder %v77_v47, 15  ;;  %vm1252_vm4 = vcmp.eq.s32.totalorder %v63_v48, 15 }
  0x30   :  { %903 = vmatprep.subr.bf16.mxu0 %v1199_v23  ;;  %v210_v41 = vld [vmem:[#allocation5 + $0x140] sm:$0xff]  ;;  %v211_v42 = vld [vmem:[#allocation5 + $0x148] sm:$0xff]  ;;  %v1221_v45 = vpack.c.bf16 %v177_v37, %v176_v36  ;;  %v1225_v49 = vpack.c.bf16 %v195_v40, %v194_v39  ;;  %v196_v51 = vld [vmem:[#allocation5 + $0xd0] sm:$0xff]  ;;  %vm1330_vm5 = vcmp.eq.s32.totalorder %v70_v59, 0 }
  0x31   :  { %933 = vmatpush3.bf16.msra.mxu1 %v1193_v18  ;;  %v178_v46 = vld [vmem:[#allocation5 + $0x40] sm:$0xff]  ;;  %v179_v50 = vld [vmem:[#allocation5 + $0x48] sm:$0xff]  ;;  %v197_v52 = vld [vmem:[#allocation5 + $0xd8] sm:$0xff]  ;;  %v1228_v53 = vpack.c.bf16 %v211_v42, %v210_v41 }
  0x32   :  { %935 = vmatprep.subr.bf16.mxu1 %v1202_v27  ;;  %v180_v54 = vld [vmem:[#allocation5 + $0x50] sm:$0xff]  ;;  %v181_v55 = vld [vmem:[#allocation5 + $0x58] sm:$0xff]  ;;  %v1238_v60 = vpack.c.bf16 %v179_v50, %v178_v46  ;;  %v1240_v61 = vpack.c.bf16 %v197_v52, %v196_v51  ;;  %v1242_v62 = vld [vmem:[#allocation2] sm:$0xff] }
  0x33   :  { %905 = vmatpush3.bf16.msra.mxu0 %v1205_v32  ;;  %v212_v56 = vld [vmem:[#allocation5 + $0x150] sm:$0xff]  ;;  %v213_v57 = vld [vmem:[#allocation5 + $0x158] sm:$0xff]  ;;  %v1244_v63 = vld [vmem:[#allocation2 + $0x8] sm:$0xff]  ;;  %v108_v3 = vrot.slane %v1242_v62, 7  ;;  %v129_v6 = vrot.slane %v1242_v62, 1  ;;  %v154_v16 = vmul.f32 0.75, %v1242_v62  ;;  %v1270_v20 = vpack.c.bf16 %v181_v55, %v180_v54 }
  0x34   :  { %907 = vmatprep.subr.bf16.mxu0 %v1211_v35  ;;  %v1246_v0 = vld [vmem:[#allocation2 + $0x18] sm:$0xff]  ;;  %v130_v7 = vrot.slane %v1244_v63, 1  ;;  %v1262_v10 = vld [vmem:[#allocation2 + $0x10] sm:$0xff]  ;;  %v1265_v11 = vpack.c.bf16 %v213_v57, %v212_v56  ;;  %v198_v12 = vld [vmem:[#allocation5 + $0xe0] sm:$0xff]  ;;  %v109_v50 = vrot.slane %v1244_v63, 7 }
  0x35   :  { %937 = vmatpush3.bf16.msra.mxu1 %v1202_v27  ;;  %v111_v5 = vrot.slane %v1246_v0, 7  ;;  %v199_v14 = vld [vmem:[#allocation5 + $0xe8] sm:$0xff]  ;;  %v132_v15 = vrot.slane %v1246_v0, 1  ;;  %v131_v19 = vrot.slane %v1262_v10, 1  ;;  %v214_v21 = vld [vmem:[#allocation5 + $0x160] sm:$0xff]  ;;  %v1279_v28 = vmul.f32 0.75, %v1246_v0  ;;  %vm682_vm6 = vmneg %vm1231_vm1 }
  0x36   :  { %939 = vmatprep.subr.bf16.mxu1 %v1214_v38  ;;  %v215_v24 = vld [vmem:[#allocation5 + $0x168] sm:$0xff]  ;;  %v136_v26 = vsel %vm133_vm2, %v129_v6, %v130_v7  ;;  %v1291_v34 = vpack.c.bf16 %v199_v14, %v198_v12  ;;  %v182_v36 = vld [vmem:[#allocation5 + $0x60] sm:$0xff]  ;;  %v200_v43 = vld [vmem:[#allocation5 + $0xf0] sm:$0xff]  ;;  %v110_v55 = vrot.slane %v1262_v10, 7 }
  0x37   :  { %909 = vmatpush3.bf16.msra.mxu0 %v1221_v45  ;;  %v116_v25 = vsel %vm112_vm0, %v111_v5, %v108_v3  ;;  %v162_v30 = vmul.f32 0.25, %v136_v26  ;;  %v137_v31 = vsel %vm133_vm2, %v132_v15, %v129_v6  ;;  %v135_v33 = vsel %vm133_vm2, %v130_v7, %v131_v19  ;;  %v183_v37 = vld [vmem:[#allocation5 + $0x68] sm:$0xff]  ;;  %v201_v46 = vld [vmem:[#allocation5 + $0xf8] sm:$0xff]  ;;  %v216_v51 = vld [vmem:[#allocation5 + $0x170] sm:$0xff] }
  0x38   :  { %911 = vmatprep.subr.bf16.mxu0 %v1225_v49  ;;  %v125_v29 = vsel %vm1231_vm1, %v1242_v62, %v116_v25  ;;  %v149_v40 = vsel %vm1248_vm3, %v1246_v0, %v137_v31  ;;  %v147_v41 = vsel %vm1252_vm4, %v1244_v63, %v135_v33  ;;  %v1300_v42 = vpack.c.bf16 %v215_v24, %v214_v21  ;;  %v217_v52 = vld [vmem:[#allocation5 + $0x178] sm:$0xff]  ;;  %v184_v57 = vld [vmem:[#allocation5 + $0x70] sm:$0xff]  ;;  %vm684_vm7 = vmneg %vm1330_vm5 }
  0x39   :  { %941 = vmatpush3.bf16.msra.mxu1 %v1214_v38  ;;  %v150_v39 = vmul.f32 0.25, %v125_v29  ;;  %v1302_v47 = vadd.f32 %v162_v30, %v154_v16  ;;  %v165_v48 = vmul.f32 0.25, %v149_v40  ;;  %v1309_v56 = vpack.c.bf16 %v183_v37, %v182_v36  ;;  %v185_v62 = vld [vmem:[#allocation5 + $0x78] sm:$0xff]  ;;  %vm686_vm8 = vmneg %vm1252_vm4 }
  0x3a   :  { %943 = vmatprep.subr.bf16.mxu1 %v1228_v53  ;;  %v155_v7 = vmul.f32 0.75, %v1244_v63  ;;  %v163_v12 = vmul.f32 0.25, %v147_v41  ;;  %v1318_v14 = vpack.c.bf16 %v201_v46, %v200_v43  ;;  %v1323_v21 = vpack.c.bf16 %v217_v52, %v216_v51  ;;  %vm688_vm9 = vmneg %vm1248_vm3 }
  0x3b   :  { %913 = vmatpush3.bf16.msra.mxu0 %v1238_v60  ;;  %v1305_v54 = vadd.f32 %v154_v16, %v150_v39  ;;  %v1312_v6 = vadd.f32 %v165_v48, %v1279_v28  ;;  %850 = vmatprep.mubr.f32.mxu1 %v1302_v47  ;;  %v134_v16 = vsel %vm133_vm2, %v131_v19, %v132_v15  ;;  %v156_v15 = vmul.f32 0.75, %v1262_v10 }
  0x3c   :  { %915 = vmatprep.subr.bf16.mxu0 %v1240_v61  ;;  %v115_v24 = vsel %vm112_vm0, %v108_v3, %v109_v50  ;;  %v114_v25 = vsel %vm112_vm0, %v109_v50, %v110_v55  ;;  %v1336_v26 = vpack.c.bf16 %v185_v62, %v184_v57  ;;  %v218_v19 = vrot.slane %v1302_v47, 7 }
  0x3d   :  { %945 = vmatpush3.bf16.msra.mxu1 %v1228_v53  ;;  %306 = vmatprep.mubr.f32.mxu0 %v1305_v54  ;;  %v221_v29 = vrot.slane %v1312_v6, 7  ;;  %v1342_v3 = vadd.f32 %v163_v12, %v155_v7  ;;  %v164_v44 = vmul.f32 0.25, %v134_v16  ;;  %v151_v59 = vmul.f32 0.25, %v115_v24 }
  0x3e   :  { %947 = vmatprep.subr.bf16.mxu1 %v1265_v11  ;;  %v127_v30 = vsel %vm1330_vm5, %v1262_v10, %v114_v25  ;;  %v113_v31 = vsel %vm112_vm0, %v110_v55, %v111_v5  ;;  %v230_v10 = vrot.slane %v1305_v54, 1 }
  0x3f   :  { %917 = vmatpush3.bf16.msra.mxu0 %v1270_v20  ;;  %v225_v33 = vsel %vm112_vm0, %v221_v29, %v218_v19  ;;  %v219_v36 = vrot.slane %v1342_v3, 7  ;;  %v152_v37 = vmul.f32 0.25, %v127_v30  ;;  %v1360_v39 = vadd.f32 %v164_v44, %v156_v15 }
  0x40   :  { %919 = vmatprep.subr.bf16.mxu0 %v1291_v34  ;;  %v1364_v0 = vadd.f32 %v155_v7, %v151_v59  ;;  %v153_v5 = vmul.f32 0.25, %v113_v31 }
  0x41   :  { %949 = vmatpush3.bf16.msra.mxu1 %v1265_v11  ;;  %v224_v58 = vsel %vm112_vm0, %v218_v19, %v219_v36  ;;  %v160_v40 = vadd.f32 %v156_v15, %v152_v37  ;;  %v220_v41 = vrot.slane %v1360_v39, 7 }
  0x42   :  { %951 = vmatprep.subr.bf16.mxu1 %v1300_v42  ;;  %v161_v43 = vadd.f32 %v1279_v28, %v153_v5 }
  0x43   :  { %921 = vmatpush3.bf16.msra.mxu0 %v1309_v56 }
  0x44   :  { %923 = vmatprep.subr.bf16.mxu0 %v1318_v14 }
  0x45   :  { %953 = vmatpush3.bf16.msra.mxu1 %v1300_v42 }
  0x46   :  { %955 = vmatprep.subr.bf16.mxu1 %v1323_v21 }
  0x47   :  { %925 = vmatpush3.bf16.msra.mxu0 %v1336_v26 }
  0x48   :  { %959 = vmatprep.subr.bf16.mxu0 %v1180_v4  ;;  %v231_v4 = vrot.slane %v1364_v0, 1 }
  0x49   :  { %957 = vmatpush3.bf16.msra.mxu1 %v1323_v21 }
  0x4a   :  { %991 = vmatprep.subr.bf16.mxu1 %v1184_v9  ;;  %683 = vmatmul.mubr.msk.f32.vlgmr.msra.gmra.mrb[0].mxu0 %vm682_vm6, %v225_v33 }
  0x4b   :  { %961 = vmatpush3.bf16.msra.mxu0 %v1182_v8  ;;  %311 = vmatprep.mubr.f32.mxu0 %v1364_v0  ;;  %v223_v8 = vsel %vm112_vm0, %v219_v36, %v220_v41 }
  0x4c   :  { %851 = vmatmul.mubr.f32.vlgmr.msra.gmra.mrb[0].mxu1 %v1342_v3  ;;  %963 = vmatprep.subr.bf16.mxu0 %v1187_v13  ;;  %v222_v13 = vsel %vm112_vm0, %v220_v41, %v221_v29 }
  0x4d   :  { %993 = vmatpush3.bf16.msra.mxu1 %v1184_v9  ;;  %853 = vmatprep.mubr.f32.mxu1 %v1360_v39  ;;  %v236_v9 = vsel %vm133_vm2, %v230_v10, %v231_v4 }
  0x4e   :  { %995 = vmatprep.subr.bf16.mxu1 %v1193_v18  ;;  %312 = vmatmul.mubr.f32.gmra.mrb[2].mxu0 %v224_v58 }
  0x4f   :  { %965 = vmatpush3.bf16.msra.mxu0 %v1191_v17  ;;  %316 = vmatprep.mubr.f32.mxu0 %v160_v40  ;;  %v232_v17 = vrot.slane %v160_v40, 1 }
  0x50   :  { %967 = vmatprep.subr.bf16.mxu0 %v1199_v23  ;;  %854 = vmatmul.mubr.f32.gmra.mrb[2].mxu1 %v1312_v6 }
  0x51   :  { %997 = vmatpush3.bf16.msra.mxu1 %v1193_v18  ;;  %888 = vmatprep.mubr.f32.mxu1 %v236_v9  ;;  %v233_v18 = vrot.slane %v161_v43, 1  ;;  %v235_v23 = vsel %vm133_vm2, %v231_v4, %v232_v17 }
  0x52   :  { %999 = vmatprep.subr.bf16.mxu1 %v1202_v27  ;;  %685 = vmatmul.mubr.msk.f32.gmra.mrb[4].mxu0 %vm684_vm7, %v223_v8 }
  0x53   :  { %969 = vmatpush3.bf16.msra.mxu0 %v1205_v32  ;;  %321 = vmatprep.mubr.f32.mxu0 %v161_v43  ;;  %v237_v32 = vsel %vm133_vm2, %v233_v18, %v230_v10 }
  0x54   :  { %971 = vmatprep.subr.bf16.mxu0 %v1211_v35 }
  0x55   :  { %1001 = vmatpush3.bf16.msra.mxu1 %v1202_v27  ;;  %v234_v27 = vsel %vm133_vm2, %v232_v17, %v233_v18 }
  0x56   :  { %1003 = vmatprep.subr.bf16.mxu1 %v1214_v38  ;;  %322 = vmatmul.mubr.f32.gmra.mrb[6].mxu0 %v222_v13 }
  0x57   :  { %973 = vmatpush3.bf16.msra.mxu0 %v1221_v45  ;;  %480 = vmatprep.mubr.f32.mxu0 %v1302_v47 }
  0x58   :  { %975 = vmatprep.subr.bf16.mxu0 %v1225_v49 }
  0x59   :  { %1005 = vmatpush3.bf16.msra.mxu1 %v1214_v38 }
  0x5a   :  { %1007 = vmatprep.subr.bf16.mxu1 %v1228_v53 }
  0x5b   :  { %977 = vmatpush3.bf16.msra.mxu0 %v1238_v60 }
  0x5c   :  { %979 = vmatprep.subr.bf16.mxu0 %v1240_v61 }
  0x5d   :  { %1009 = vmatpush3.bf16.msra.mxu1 %v1228_v53 }
  0x5e   :  { %1011 = vmatprep.subr.bf16.mxu1 %v1265_v11 }
  0x5f   :  { %981 = vmatpush3.bf16.msra.mxu0 %v1270_v20 }
  0x60   :  { %983 = vmatprep.subr.bf16.mxu0 %v1291_v34 }
  0x61   :  { %1013 = vmatpush3.bf16.msra.mxu1 %v1265_v11 }
  0x62   :  { %1015 = vmatprep.subr.bf16.mxu1 %v1300_v42 }
  0x63   :  { %985 = vmatpush3.bf16.msra.mxu0 %v1309_v56 }
  0x64   :  { %987 = vmatprep.subr.bf16.mxu0 %v1318_v14 }
  0x65   :  { %1017 = vmatpush3.bf16.msra.mxu1 %v1300_v42 }
  0x66   :  { %1019 = vmatprep.subr.bf16.mxu1 %v1323_v21 }
  0x67   :  { %989 = vmatpush3.bf16.msra.mxu0 %v1336_v26 }
  0x69   :  { %1021 = vmatpush3.bf16.msra.mxu1 %v1323_v21 }
  0x6a   :  { %481 = vmatmul.mubr.f32.vlgmr.msra.gmra.mrb[8].mxu0 %v1305_v54 }
  0x6b   :  { %485 = vmatprep.mubr.f32.mxu0 %v1342_v3 }
  0x6c   :  { %889 = vmatmul.mubr.msk.f32.vlgmr.msra.gmra.mrb[4].mxu1 %vm686_vm8, %v235_v23 }
  0x6d   :  { %891 = vmatprep.mubr.f32.mxu1 %v234_v27 }
  0x6e   :  { %486 = vmatmul.mubr.f32.gmra.mrb[10].mxu0 %v1364_v0 }
  0x6f   :  { %490 = vmatprep.mubr.f32.mxu0 %v1360_v39 }
  0x70   :  { %892 = vmatmul.mubr.msk.f32.gmra.mrb[6].mxu1 %vm688_vm9, %v237_v32 }
  0x72   :  { %491 = vmatmul.mubr.f32.gmra.mrb[12].mxu0 %v160_v40 }
  0x73   :  { %495 = vmatprep.mubr.f32.mxu0 %v1312_v6 }
  0x76   :  { %496 = vmatmul.mubr.f32.gmra.mrb[14].mxu0 %v161_v43 }
 0x11d   :  { %v722_v35 = vpop.f32.mrb[0].mxu0 }
 0x11e   :  { %v723_v38 = vpop.f32.mrb[1].mxu0 }
 0x11f   :  { %v852_v45 = vpop.f32.mrb[0].mxu1  ;;  %v724_v49 = vadd.f32 %v723_v38, %v722_v35 }
 0x120   :  { %v393_v53 = vpop.f32.mrb[1].mxu1 }
 0x121   :  { %v394_v60 = vadd.f32 %v724_v49, %v393_v53  ;;  %v725_v22 = vpop.f32.mrb[2].mxu0 }
 0x122   :  { %v726_v61 = vpop.f32.mrb[3].mxu0 }
 0x123   :  { %v412_v2 = vmax.f32 %v394_v60, 0.0  ;;  %v727_v1 = vadd.f32 %v726_v61, %v725_v22  ;;  %v855_v11 = vpop.f32.mrb[2].mxu1 }
 0x124   :  { %v403_v34 = vpop.f32.mrb[3].mxu1 }
 0x125   :  { %590 = vst [vmem:[#allocation7] sm:$0xff] %v412_v2  ;;  %v399_v20 = vadd.f32 %v852_v45, %v727_v1  ;;  %v728_v28 = vpop.f32.mrb[4].mxu0  ;;  %v618_v48 = vmul.f32 %v412_v2, %v412_v2 }
 0x126   :  { %v729_v42 = vpop.f32.mrb[5].mxu0 }
 0x127   :  { %v413_v46 = vmax.f32 %v399_v20, 0.0  ;;  %v730_v47 = vadd.f32 %v729_v42, %v728_v28 }
 0x129   :  { %591 = vst [vmem:[#allocation7 + $0x8] sm:$0xff] %v413_v46  ;;  %v619_v50 = vmul.f32 %v413_v46, %v413_v46  ;;  %v404_v51 = vadd.f32 %v730_v47, %v403_v34  ;;  %v599_v52 = vadd.f32 %v413_v46, %v412_v2  ;;  %v731_v54 = vpop.f32.mrb[6].mxu0 }
 0x12a   :  { %v732_v55 = vpop.f32.mrb[7].mxu0 }
 0x12b   :  { %v414_v56 = vmax.f32 %v404_v51, 0.0  ;;  %v622_v57 = vadd.f32 %v619_v50, %v618_v48  ;;  %v733_v62 = vadd.f32 %v732_v55, %v731_v54 }
 0x12d   :  { %592 = vst [vmem:[#allocation7 + $0x10] sm:$0xff] %v414_v56  ;;  %v600_v6 = vadd.f32 %v599_v52, %v414_v56  ;;  %v620_v7 = vmul.f32 %v414_v56, %v414_v56  ;;  %v409_v12 = vadd.f32 %v855_v11, %v733_v62 }
 0x12f   :  { %v623_v14 = vadd.f32 %v622_v57, %v620_v7  ;;  %v415_v16 = vmax.f32 %v409_v12, 0.0 }
 0x131   :  { %593 = vst [vmem:[#allocation7 + $0x18] sm:$0xff] %v415_v16  ;;  %v601_v21 = vadd.f32 %v600_v6, %v415_v16  ;;  %v621_v24 = vmul.f32 %v415_v16, %v415_v16 }
 0x133   :  { %v624_v63 = vadd.f32 %v623_v14, %v621_v24  ;;  %v602_v58 = vrot.slane %v601_v21, 4 }
 0x135   :  { %v625_v13 = vrot.slane %v624_v63, 4  ;;  %v603_v27 = vadd.f32 %v602_v58, %v601_v21 }
 0x137   :  { %v626_v45 = vadd.f32 %v625_v13, %v624_v63  ;;  %v604_v60 = vrot.slane %v603_v27, 2 }
 0x13d   :  { %v786_v25 = vpop.f32.mrb[8].mxu0 }
 0x13e   :  { %v787_v26 = vpop.f32.mrb[9].mxu0 }
 0x13f   :  { %v890_v15 = vpop.f32.mrb[4].mxu1  ;;  %v788_v19 = vadd.f32 %v787_v26, %v786_v25 }
 0x140   :  { %v567_v29 = vpop.f32.mrb[5].mxu1 }
 0x141   :  { %v568_v3 = vadd.f32 %v788_v19, %v567_v29  ;;  %v789_v44 = vpop.f32.mrb[10].mxu0 }
 0x142   :  { %v790_v59 = vpop.f32.mrb[11].mxu0 }
 0x143   :  { %v893_v30 = vpop.f32.mrb[6].mxu1  ;;  %v586_v31 = vmax.f32 %v568_v3, 0.0  ;;  %v791_v33 = vadd.f32 %v790_v59, %v789_v44 }
 0x144   :  { %v577_v36 = vpop.f32.mrb[7].mxu1 }
 0x145   :  { %595 = vst [vmem:[#allocation7 + $0x20] sm:$0xff] %v586_v31  ;;  %v573_v37 = vadd.f32 %v890_v15, %v791_v33  ;;  %v792_v39 = vpop.f32.mrb[12].mxu0  ;;  %v631_v40 = vmul.f32 %v586_v31, %v586_v31 }
 0x146   :  { %v793_v0 = vpop.f32.mrb[13].mxu0 }
 0x147   :  { %v587_v5 = vmax.f32 %v573_v37, 0.0  ;;  %v794_v10 = vadd.f32 %v793_v0, %v792_v39 }
 0x149   :  { %596 = vst [vmem:[#allocation7 + $0x28] sm:$0xff] %v587_v5  ;;  %v632_v41 = vmul.f32 %v587_v5, %v587_v5  ;;  %v578_v4 = vadd.f32 %v794_v10, %v577_v36  ;;  %v608_v8 = vadd.f32 %v587_v5, %v586_v31  ;;  %v795_v43 = vpop.f32.mrb[14].mxu0 }
 0x14a   :  { %v796_v9 = vpop.f32.mrb[15].mxu0 }
 0x14b   :  { %v588_v17 = vmax.f32 %v578_v4, 0.0  ;;  %v635_v18 = vadd.f32 %v632_v41, %v631_v40  ;;  %v797_v23 = vadd.f32 %v796_v9, %v795_v43 }
 0x14d   :  { %597 = vst [vmem:[#allocation7 + $0x30] sm:$0xff] %v588_v17  ;;  %v609_v32 = vadd.f32 %v608_v8, %v588_v17  ;;  %v633_v35 = vmul.f32 %v588_v17, %v588_v17  ;;  %v583_v38 = vadd.f32 %v893_v30, %v797_v23 }
 0x14f   :  { %v636_v49 = vadd.f32 %v635_v18, %v633_v35  ;;  %v589_v53 = vmax.f32 %v583_v38, 0.0 }
 0x151   :  { %598 = vst [vmem:[#allocation7 + $0x38] sm:$0xff] %v589_v53  ;;  %v610_v22 = vadd.f32 %v609_v32, %v589_v53  ;;  %v634_v61 = vmul.f32 %v589_v53, %v589_v53 }
 0x152   :  { %1083 = shalt.err (!%p1080_p6)
}
 0x153   :  { %s1084_s14 = scalar_lea.hbm %s1460_s2, 1024 }
 0x154   :  { %p1085_p7 = scmp.ne.s32.totalorder %s1460_s2, %s1084_s14  ;;  %p1088_p8 = scmp.lt.u32.totalorder %s1084_s14, %s1460_s2 }
 0x156   :  { %p1090_p9 = pnand %p1088_p8, %p1085_p7 }
 0x158   :  { %1093 = shalt.err (!%p1090_p9)
}
 0x159   :  { %661 = dma.vmem_to_hbm [thread:$0]  %s656_s10, 1024, %s1460_s2, [#allocation4], %s1125_s22, %s1125_s22, %s1126_s23   ;;  %v627_v2 = vrot.slane %v626_v45, 2  ;;  %v611_v1 = vrot.slane %v610_v22, 4  ;;  %v637_v11 = vadd.f32 %v636_v49, %v634_v61  ;;  %v605_v20 = vadd.f32 %v604_v60, %v603_v27 }
 0x15a   :  { %vm645_vm10 = vcmask 1040384   ;;  %s1129_s2 = smov [#allocation8]   ;;  %vm647_vm11 = vcmask 1041408  }
 0x15b   :  { %v612_v28 = vadd.f32 %v611_v1, %v610_v22  ;;  %v638_v34 = vrot.slane %v637_v11, 4  ;;  %v628_v47 = vadd.f32 %v627_v2, %v626_v45  ;;  %v606_v51 = vrot.slane %v605_v20, 1  ;;  %s668_s21 = sshll.u32 %s1129_s2, 4  ;;  %s669_s21 = int_to_ptr.vmem [resolvable:$true] %s668_s21 }
 0x15c   :  { %s1094_s22 = scalar_lea.vmem %s669_s21, 128  ;;  %p1099_p11 = scmp.lt.s32.totalorder %s669_s21, %s669_s21 }
 0x15d   :  { %v613_v42 = vrot.slane %v612_v28, 2  ;;  %v639_v46 = vadd.f32 %v638_v34, %v637_v11  ;;  %v629_v54 = vrot.slane %v628_v47, 1  ;;  %v607_v56 = vadd.f32 %v606_v51, %v605_v20  ;;  %p1095_p10 = scmp.ne.s32.totalorder %s669_s21, %s1094_s22  ;;  %p1100_p12 = scmp.lt.s32.totalorder %s1094_s22, %s1094_s22 }
 0x15f   :  { %v614_v48 = vadd.f32 %v613_v42, %v612_v28  ;;  %v640_v50 = vrot.slane %v639_v46, 2  ;;  %v630_v7 = vadd.f32 %v629_v54, %v628_v47  ;;  %p1101_p13 = por %p1100_p12, %p1099_p11 }
 0x161   :  { %v615_v52 = vrot.slane %v614_v48, 1  ;;  %v641_v55 = vadd.f32 %v640_v50, %v639_v46  ;;  %p1102_p0 = pnand %p1101_p13, %p1095_p10 }
 0x163   :  { %v616_v57 = vadd.f32 %v615_v52, %v614_v48  ;;  %v642_v62 = vrot.slane %v641_v55, 1 }
 0x165   :  { %v617_v6 = vadd.f32 %v616_v57, %v607_v56  ;;  %v643_v12 = vadd.f32 %v642_v62, %v641_v55 }
 0x167   :  { %v644_v14 = vadd.f32 %v643_v12, %v630_v7 }
 0x169   :  { %v646_v16 = vsel %vm645_vm10, %v617_v6, %v644_v14 }
 0x16a   :  { %v648_v21 = vsel %vm647_vm11, %v646_v16, 0.0 }
 0x16b   :  { %649 = vst [vmem:[#allocation8] sm:$0xff] %v648_v21 }
 0x16c   :  { %1105 = shalt.err (!%p1102_p0)
}
 0x16d   :  { %s1106_s25 = scalar_lea.hbm %s1461_s3, 128 }
 0x16e   :  { %p1107_p1 = scmp.ne.s32.totalorder %s1461_s3, %s1106_s25  ;;  %p1110_p2 = scmp.lt.u32.totalorder %s1106_s25, %s1461_s3 }
 0x170   :  { %p1112_p3 = pnand %p1110_p2, %p1107_p1 }
 0x172   :  { %1115 = shalt.err (!%p1112_p3)
}
 0x173   :  { %671 = dma.vmem_to_hbm [thread:$0]  %s669_s21, 128, %s1461_s3, [#allocation9]  }
 0x174   :  { %1120 = dma.done.wait [#allocation4], 1024  }
 0x175   :  { %1121 = vsyncadd [#allocation4], 4294966272 }
 0x176   :  { %1122 = dma.done.wait [#allocation9], 128  }
 0x177   :  { %1123 = vsyncadd [#allocation9], 4294967168 }
 0x178   :  { %678 = vsyncpa [#allocation3], 1 }
 0x179   :  { %679 = vsyncpa [#allocation6], 1 }
 0x17a   :  { %680 = vsyncpa [#allocation4], 1 }
 0x17b   :  { %681 = vsyncpa [#allocation9], 1 }

</bundles_post_ra>
